<compile_context>
chip_gen: v7x
topology: tpu7x:2x2x1
jax: 0.10.0
libtpu: 0.0.40
codegen_flags: <defaults>
</compile_context>

<pallas_src>
import jax
import jax.numpy as jnp
from jax.experimental import pallas as pl
from jax.experimental.pallas import tpu as pltpu

PATCH = 16          # DINO ViT-S/16 patch size
EMBED = 384         # DINO ViT-S embedding dim
HID1 = 256
HID2 = 128
NUM_CLASSES = 3
OUT_PAD = 128       # lane-dense padded output width
LN_EPS = 1e-5       # PyTorch nn.LayerNorm default eps


def _round_up(n, m):
    return ((n + m - 1) // m) * m


def _dino_head_kernel(pooled_ref, wp_ref, bp_ref,
                      w1_ref, b1_ref, g_ref, beta_ref,
                      w2_ref, b2_ref, w3_ref, b3_ref,
                      out_ref):
    # ---- stand-in DINO feature extractor: patch embed of pooled patches ----
    # pooled: (TB, 768) bf16, wp: (768, 384) bf16 -> MXU, f32 accumulation.
    feat = jnp.dot(pooled_ref[...], wp_ref[...],
                   preferred_element_type=jnp.float32) + bp_ref[...]   # (TB, 384)

    # ---- classifier head (exact semantics of the nn.Sequential) ------------
    # Linear(384, 256)
    h = jnp.dot(feat.astype(jnp.bfloat16), w1_ref[...],
                preferred_element_type=jnp.float32) + b1_ref[...]      # (TB, 256)
    # LayerNorm(256) — statistics in f32.
    mu = jnp.mean(h, axis=-1, keepdims=True)
    var = jnp.mean(jnp.square(h - mu), axis=-1, keepdims=True)
    h = (h - mu) * jax.lax.rsqrt(var + LN_EPS)
    h = h * g_ref[...] + beta_ref[...]
    # Linear(256, 128) + ReLU
    h = jnp.dot(h.astype(jnp.bfloat16), w2_ref[...],
                preferred_element_type=jnp.float32) + b2_ref[...]      # (TB, 128)
    h = jnp.maximum(h, 0.0)
    # TODO(synk): nn.Dropout is identity in eval mode; training-mode dropout
    # (rate from external config file) is not applied here.
    # Linear(128, 3), zero-padded to 128 output lanes -> lane-dense store
    # (tiny matmul, kept in f32 for exact final logits).
    out_ref[...] = jnp.dot(h, w3_ref[...],
                           preferred_element_type=jnp.float32) + b3_ref[...]


def _pool_patches(x):
    """Image -> mean-pooled flattened patch vector, (B, PATCH*PATCH*C)."""
    if x.ndim == 4 and x.shape[3] == 3:
        pass  # NHWC accepted directly (PyTorch would permute to NCHW here)
    elif x.ndim != 4 or x.shape[1] != 3:
        raise ValueError(f"Unexpected input dimensions: {x.shape}")
    else:
        x = jnp.transpose(x, (0, 2, 3, 1))  # NCHW -> NHWC
    B, H, W, C = x.shape
    gh, gw = H // PATCH, W // PATCH
    pooled = x.astype(jnp.float32).reshape(B, gh, PATCH, gw, PATCH, C)
    return jnp.mean(pooled, axis=(1, 3)).reshape(B, PATCH * PATCH * C)


def custom_dino_norm_forward(x, params, *, block_b=512):
    """Forward pass of CustomDINONormModel.

    x: float32 image batch, NHWC (B, H, W, 3) or NCHW (B, 3, H, W),
       H and W divisible by 16.
    """
    pooled = _pool_patches(x)
    B, patch_dim = pooled.shape

    # Batch tiling: pad B to a multiple of the tile so the (8, 128) layout
    # constraint is respected and the grid double-buffers the activation.
    tb = min(block_b, _round_up(B, 8))
    B_pad = _round_up(B, tb)
    if B_pad != B:
        pooled = jnp.pad(pooled, ((0, B_pad - B), (0, 0)))
    pooled = pooled.astype(jnp.bfloat16)

    # Weights: large matmul operands in bf16 (MXU), small params in f32.
    wp = params["wp"].astype(jnp.bfloat16)
    w1 = params["w1"].astype(jnp.bfloat16)
    w2 = params["w2"].astype(jnp.bfloat16)
    # Pad final Linear(128, 3) to 128 output columns (zeros) for lane-dense IO.
    w3 = jnp.zeros((HID2, OUT_PAD), jnp.float32).at[:, :NUM_CLASSES].set(
        params["w3"])
    b3 = jnp.zeros((1, OUT_PAD), jnp.float32).at[:, :NUM_CLASSES].set(
        params["b3"])

    args = (
        pooled,
        wp, params["bp"],
        w1, params["b1"],
        params["ln_gamma"], params["ln_beta"],
        w2, params["b2"],
        w3, b3,
    )

    def const_spec(shape):
        # Constant block index -> weight stays VMEM-resident across grid steps.
        return pl.BlockSpec(shape, lambda i: (0, 0))

    grid = (B_pad // tb,)
    in_specs = [pl.BlockSpec((tb, patch_dim), lambda i: (i, 0))] + [
        const_spec(a.shape) for a in args[1:]
    ]

    out = pl.pallas_call(
        _dino_head_kernel,
        out_shape=jax.ShapeDtypeStruct((B_pad, OUT_PAD), jnp.float32),
        grid_spec=pltpu.PrefetchScalarGridSpec(
            num_scalar_prefetch=0,
            grid=grid,
            in_specs=in_specs,
            out_specs=pl.BlockSpec((tb, OUT_PAD), lambda i: (i, 0)),
        ),
        compiler_params=pltpu.CompilerParams(
            dimension_semantics=("parallel",)),
    )(*args)

    return out[:B, :NUM_CLASSES]


def reference_forward(x, params):
    """Pure-JAX reference with the same dtype policy (bf16 MXU, f32 acc)."""
    pooled = _pool_patches(x).astype(jnp.bfloat16)
    feat = jnp.dot(pooled, params["wp"].astype(jnp.bfloat16),
                   preferred_element_type=jnp.float32) + params["bp"]
    h = jnp.dot(feat.astype(jnp.bfloat16), params["w1"].astype(jnp.bfloat16),
                preferred_element_type=jnp.float32) + params["b1"]
    mu = jnp.mean(h, axis=-1, keepdims=True)
    var = jnp.mean(jnp.square(h - mu), axis=-1, keepdims=True)
    h = (h - mu) * jax.lax.rsqrt(var + LN_EPS)
    h = h * params["ln_gamma"] + params["ln_beta"]
    h = jnp.dot(h.astype(jnp.bfloat16), params["w2"].astype(jnp.bfloat16),
                preferred_element_type=jnp.float32) + params["b2"]
    h = jnp.maximum(h, 0.0)
    return jnp.dot(h, params["w3"],
                   preferred_element_type=jnp.float32) + params["b3"]


def init_params(key, patch_dim):
    """Deterministic parameter init (shapes from the module __init__)."""
    ks = jax.random.split(key, 4)

    def lin(k, fan_in, fan_out):
        # uniform(-1/sqrt(fan_in), 1/sqrt(fan_in)), like torch.nn.Linear
        bound = 1.0 / jnp.sqrt(fan_in)
        kw, kb = jax.random.split(k)
        w = jax.random.uniform(kw, (fan_in, fan_out), jnp.float32, -bound, bound)
        b = jax.random.uniform(kb, (1, fan_out), jnp.float32, -bound, bound)
        return w, b

    wp, bp = lin(ks[0], patch_dim, EMBED)      # stand-in patch embedding
    w1, b1 = lin(ks[1], EMBED, HID1)           # Linear(384, 256)
    w2, b2 = lin(ks[2], HID1, HID2)            # Linear(256, 128)
    w3, b3 = lin(ks[3], HID2, NUM_CLASSES)     # Linear(128, 3)
    return dict(
        wp=wp, bp=bp,
        w1=w1, b1=b1,
        ln_gamma=jnp.ones((1, HID1), jnp.float32),   # LayerNorm(256) weight
        ln_beta=jnp.zeros((1, HID1), jnp.float32),   # LayerNorm(256) bias
        w2=w2, b2=b2,
        w3=w3, b3=b3,
    )


if __name__ == "__main__":
    key = jax.random.PRNGKey(0)
    k_x, k_p = jax.random.split(key)

    B, H, W, C = 2, 32, 32, 3           # small, patch-divisible image batch
    x = jax.random.normal(k_x, (B, H, W, C), jnp.float32)
    params = init_params(k_p, PATCH * PATCH * C)

    out = custom_dino_norm_forward(x, params)
    out = jax.block_until_ready(out)
    assert out.shape == (B, NUM_CLASSES) and out.dtype == jnp.float32
    assert bool(jnp.all(jnp.isfinite(out)))

    ref = jax.block_until_ready(reference_forward(x, params))
    assert bool(jnp.allclose(out, ref, atol=2e-2, rtol=2e-2))

    print("KERNEL_OK")
</pallas_src>

<mosaic_0001>
module attributes {stable_mosaic.version = 11 : i64} {
  func.func @_dino_head_kernel(%arg0: i32, %arg1: memref<8x768xbf16, #tpu.memory_space<vmem>>, %arg2: memref<768x384xbf16, #tpu.memory_space<vmem>>, %arg3: memref<1x384xf32, #tpu.memory_space<vmem>>, %arg4: memref<384x256xbf16, #tpu.memory_space<vmem>>, %arg5: memref<1x256xf32, #tpu.memory_space<vmem>>, %arg6: memref<1x256xf32, #tpu.memory_space<vmem>>, %arg7: memref<1x256xf32, #tpu.memory_space<vmem>>, %arg8: memref<256x128xbf16, #tpu.memory_space<vmem>>, %arg9: memref<1x128xf32, #tpu.memory_space<vmem>>, %arg10: memref<128x128xf32, #tpu.memory_space<vmem>>, %arg11: memref<1x128xf32, #tpu.memory_space<vmem>>, %arg12: memref<8x128xf32, #tpu.memory_space<vmem>>) attributes {dimension_semantics = [#tpu.dimension_semantics<parallel>], iteration_bounds = array<i64: 1>, scalar_prefetch = 0 : i64, scratch_operands = 0 : i64, tpu.core_type = #tpu.core_type<tc>, window_params = [{transform_indices = @transform_0, window_bounds = array<i64: 8, 768>}, {pipeline_mode = #tpu.pipeline_mode<synchronous>, transform_indices = @transform_1, window_bounds = array<i64: 768, 384>}, {pipeline_mode = #tpu.pipeline_mode<synchronous>, transform_indices = @transform_2, window_bounds = array<i64: 1, 384>}, {pipeline_mode = #tpu.pipeline_mode<synchronous>, transform_indices = @transform_3, window_bounds = array<i64: 384, 256>}, {pipeline_mode = #tpu.pipeline_mode<synchronous>, transform_indices = @transform_4, window_bounds = array<i64: 1, 256>}, {pipeline_mode = #tpu.pipeline_mode<synchronous>, transform_indices = @transform_5, window_bounds = array<i64: 1, 256>}, {pipeline_mode = #tpu.pipeline_mode<synchronous>, transform_indices = @transform_6, window_bounds = array<i64: 1, 256>}, {pipeline_mode = #tpu.pipeline_mode<synchronous>, transform_indices = @transform_7, window_bounds = array<i64: 256, 128>}, {pipeline_mode = #tpu.pipeline_mode<synchronous>, transform_indices = @transform_8, window_bounds = array<i64: 1, 128>}, {pipeline_mode = #tpu.pipeline_mode<synchronous>, transform_indices = @transform_9, window_bounds = array<i64: 128, 128>}, {pipeline_mode = #tpu.pipeline_mode<synchronous>, transform_indices = @transform_10, window_bounds = array<i64: 1, 128>}, {transform_indices = @transform_11, window_bounds = array<i64: 8, 128>}]} {
    %c0 = arith.constant 0 : index
    %c0_0 = arith.constant 0 : index
    %0 = vector.load %arg1[%c0, %c0_0] : memref<8x768xbf16, #tpu.memory_space<vmem>>, vector<8x768xbf16>
    %c0_1 = arith.constant 0 : index
    %c0_2 = arith.constant 0 : index
    %1 = vector.load %arg2[%c0_1, %c0_2] : memref<768x384xbf16, #tpu.memory_space<vmem>>, vector<768x384xbf16>
    %cst = arith.constant dense<0.000000e+00> : vector<8x384xf32>
    %2 = tpu.matmul %0, %1, %cst {dimension_numbers = #tpu.dot_dimension_numbers<[1], [0], [0], [1], [0, 0, 1, 1], [], []>} : vector<8x768xbf16>, vector<768x384xbf16>, vector<8x384xf32> -> vector<8x384xf32>
    %c0_3 = arith.constant 0 : index
    %c0_4 = arith.constant 0 : index
    %3 = vector.load %arg3[%c0_3, %c0_4] : memref<1x384xf32, #tpu.memory_space<vmem>>, vector<1x384xf32>
    %4 = vector.broadcast %3 : vector<1x384xf32> to vector<8x384xf32>
    %5 = arith.addf %2, %4 : vector<8x384xf32>
    %6 = arith.truncf %5 : vector<8x384xf32> to vector<8x384xbf16>
    %c0_5 = arith.constant 0 : index
    %c0_6 = arith.constant 0 : index
    %7 = vector.load %arg4[%c0_5, %c0_6] : memref<384x256xbf16, #tpu.memory_space<vmem>>, vector<384x256xbf16>
    %cst_7 = arith.constant dense<0.000000e+00> : vector<8x256xf32>
    %8 = tpu.matmul %6, %7, %cst_7 {dimension_numbers = #tpu.dot_dimension_numbers<[1], [0], [0], [1], [0, 0, 1, 1], [], []>} : vector<8x384xbf16>, vector<384x256xbf16>, vector<8x256xf32> -> vector<8x256xf32>
    %c0_8 = arith.constant 0 : index
    %c0_9 = arith.constant 0 : index
    %9 = vector.load %arg5[%c0_8, %c0_9] : memref<1x256xf32, #tpu.memory_space<vmem>>, vector<1x256xf32>
    %10 = vector.broadcast %9 : vector<1x256xf32> to vector<8x256xf32>
    %11 = arith.addf %8, %10 : vector<8x256xf32>
    %cst_10 = arith.constant dense<0.000000e+00> : vector<8xf32>
    %12 = vector.multi_reduction <add>, %11, %cst_10 [1] : vector<8x256xf32> to vector<8xf32>
    %13 = vector.shape_cast %12 : vector<8xf32> to vector<8x1xf32>
    %cst_11 = arith.constant 2.560000e+02 : f32
    %14 = vector.broadcast %cst_11 : f32 to vector<8x1xf32>
    %15 = arith.divf %13, %14 : vector<8x1xf32>
    %16 = vector.broadcast %15 : vector<8x1xf32> to vector<8x256xf32>
    %17 = arith.subf %11, %16 : vector<8x256xf32>
    %18 = arith.mulf %17, %17 : vector<8x256xf32>
    %cst_12 = arith.constant dense<0.000000e+00> : vector<8xf32>
    %19 = vector.multi_reduction <add>, %18, %cst_12 [1] : vector<8x256xf32> to vector<8xf32>
    %20 = vector.shape_cast %19 : vector<8xf32> to vector<8x1xf32>
    %cst_13 = arith.constant 2.560000e+02 : f32
    %21 = vector.broadcast %cst_13 : f32 to vector<8x1xf32>
    %22 = arith.divf %20, %21 : vector<8x1xf32>
    %23 = vector.broadcast %15 : vector<8x1xf32> to vector<8x256xf32>
    %24 = arith.subf %11, %23 : vector<8x256xf32>
    %cst_14 = arith.constant 9.99999974E-6 : f32
    %25 = vector.broadcast %cst_14 : f32 to vector<8x1xf32>
    %26 = arith.addf %22, %25 : vector<8x1xf32>
    %27 = math.rsqrt %26 : vector<8x1xf32>
    %28 = vector.broadcast %27 : vector<8x1xf32> to vector<8x256xf32>
    %29 = arith.mulf %24, %28 : vector<8x256xf32>
    %c0_15 = arith.constant 0 : index
    %c0_16 = arith.constant 0 : index
    %30 = vector.load %arg6[%c0_15, %c0_16] : memref<1x256xf32, #tpu.memory_space<vmem>>, vector<1x256xf32>
    %31 = vector.broadcast %30 : vector<1x256xf32> to vector<8x256xf32>
    %32 = arith.mulf %29, %31 : vector<8x256xf32>
    %c0_17 = arith.constant 0 : index
    %c0_18 = arith.constant 0 : index
    %33 = vector.load %arg7[%c0_17, %c0_18] : memref<1x256xf32, #tpu.memory_space<vmem>>, vector<1x256xf32>
    %34 = vector.broadcast %33 : vector<1x256xf32> to vector<8x256xf32>
    %35 = arith.addf %32, %34 : vector<8x256xf32>
    %36 = arith.truncf %35 : vector<8x256xf32> to vector<8x256xbf16>
    %c0_19 = arith.constant 0 : index
    %c0_20 = arith.constant 0 : index
    %37 = vector.load %arg8[%c0_19, %c0_20] : memref<256x128xbf16, #tpu.memory_space<vmem>>, vector<256x128xbf16>
    %cst_21 = arith.constant dense<0.000000e+00> : vector<8x128xf32>
    %38 = tpu.matmul %36, %37, %cst_21 {dimension_numbers = #tpu.dot_dimension_numbers<[1], [0], [0], [1], [0, 0, 1, 1], [], []>} : vector<8x256xbf16>, vector<256x128xbf16>, vector<8x128xf32> -> vector<8x128xf32>
    %c0_22 = arith.constant 0 : index
    %c0_23 = arith.constant 0 : index
    %39 = vector.load %arg9[%c0_22, %c0_23] : memref<1x128xf32, #tpu.memory_space<vmem>>, vector<1x128xf32>
    %40 = vector.broadcast %39 : vector<1x128xf32> to vector<8x128xf32>
    %41 = arith.addf %38, %40 : vector<8x128xf32>
    %cst_24 = arith.constant 0.000000e+00 : f32
    %42 = vector.broadcast %cst_24 : f32 to vector<8x128xf32>
    %43 = arith.maximumf %41, %42 : vector<8x128xf32>
    %c0_25 = arith.constant 0 : index
    %c0_26 = arith.constant 0 : index
    %44 = vector.load %arg10[%c0_25, %c0_26] : memref<128x128xf32, #tpu.memory_space<vmem>>, vector<128x128xf32>
    %cst_27 = arith.constant dense<0.000000e+00> : vector<8x128xf32>
    %45 = tpu.matmul %43, %44, %cst_27 {dimension_numbers = #tpu.dot_dimension_numbers<[1], [0], [0], [1], [0, 0, 1, 1], [], []>} : vector<8x128xf32>, vector<128x128xf32>, vector<8x128xf32> -> vector<8x128xf32>
    %c0_28 = arith.constant 0 : index
    %c0_29 = arith.constant 0 : index
    %46 = vector.load %arg11[%c0_28, %c0_29] : memref<1x128xf32, #tpu.memory_space<vmem>>, vector<1x128xf32>
    %47 = vector.broadcast %46 : vector<1x128xf32> to vector<8x128xf32>
    %48 = arith.addf %45, %47 : vector<8x128xf32>
    %c0_30 = arith.constant 0 : index
    %c0_31 = arith.constant 0 : index
    %49 = vector.load %arg12[%c0_30, %c0_31] : memref<8x128xf32, #tpu.memory_space<vmem>>, vector<8x128xf32>
    tpu.vector_store %arg12[%c0_30, %c0_31], %48 {strides = array<i32>} : memref<8x128xf32, #tpu.memory_space<vmem>>, vector<8x128xf32>,
    return
  }
  func.func @transform_0(%arg0: i32) -> (i32, i32) {
    %c0_i32 = arith.constant 0 : i32
    %c0_i32_0 = arith.constant 0 : i32
    return %arg0, %c0_i32 : i32, i32
  }
  func.func @transform_1(%arg0: i32) -> (i32, i32) {
    %c0_i32 = arith.constant 0 : i32
    %c0_i32_0 = arith.constant 0 : i32
    %c0_i32_1 = arith.constant 0 : i32
    return %c0_i32, %c0_i32_0 : i32, i32
  }
  func.func @transform_2(%arg0: i32) -> (i32, i32) {
    %c0_i32 = arith.constant 0 : i32
    %c0_i32_0 = arith.constant 0 : i32
    %c0_i32_1 = arith.constant 0 : i32
    return %c0_i32, %c0_i32_0 : i32, i32
  }
  func.func @transform_3(%arg0: i32) -> (i32, i32) {
    %c0_i32 = arith.constant 0 : i32
    %c0_i32_0 = arith.constant 0 : i32
    %c0_i32_1 = arith.constant 0 : i32
    return %c0_i32, %c0_i32_0 : i32, i32
  }
  func.func @transform_4(%arg0: i32) -> (i32, i32) {
    %c0_i32 = arith.constant 0 : i32
    %c0_i32_0 = arith.constant 0 : i32
    %c0_i32_1 = arith.constant 0 : i32
    return %c0_i32, %c0_i32_0 : i32, i32
  }
  func.func @transform_5(%arg0: i32) -> (i32, i32) {
    %c0_i32 = arith.constant 0 : i32
    %c0_i32_0 = arith.constant 0 : i32
    %c0_i32_1 = arith.constant 0 : i32
    return %c0_i32, %c0_i32_0 : i32, i32
  }
  func.func @transform_6(%arg0: i32) -> (i32, i32) {
    %c0_i32 = arith.constant 0 : i32
    %c0_i32_0 = arith.constant 0 : i32
    %c0_i32_1 = arith.constant 0 : i32
    return %c0_i32, %c0_i32_0 : i32, i32
  }
  func.func @transform_7(%arg0: i32) -> (i32, i32) {
    %c0_i32 = arith.constant 0 : i32
    %c0_i32_0 = arith.constant 0 : i32
    %c0_i32_1 = arith.constant 0 : i32
    return %c0_i32, %c0_i32_0 : i32, i32
  }
  func.func @transform_8(%arg0: i32) -> (i32, i32) {
    %c0_i32 = arith.constant 0 : i32
    %c0_i32_0 = arith.constant 0 : i32
    %c0_i32_1 = arith.constant 0 : i32
    return %c0_i32, %c0_i32_0 : i32, i32
  }
  func.func @transform_9(%arg0: i32) -> (i32, i32) {
    %c0_i32 = arith.constant 0 : i32
    %c0_i32_0 = arith.constant 0 : i32
    %c0_i32_1 = arith.constant 0 : i32
    return %c0_i32, %c0_i32_0 : i32, i32
  }
  func.func @transform_10(%arg0: i32) -> (i32, i32) {
    %c0_i32 = arith.constant 0 : i32
    %c0_i32_0 = arith.constant 0 : i32
    %c0_i32_1 = arith.constant 0 : i32
    return %c0_i32, %c0_i32_0 : i32, i32
  }
  func.func @transform_11(%arg0: i32) -> (i32, i32) {
    %c0_i32 = arith.constant 0 : i32
    %c0_i32_0 = arith.constant 0 : i32
    return %arg0, %c0_i32 : i32, i32
  }
}

</mosaic_0001>

<bundles_post_ra>
// kernel: tpu_custom_call.1
= control target key start
LH: loop header
LB: loop body
LE: loop exit
PB: predicated region body
PF: predicated region fallthrough
CT: control target
= control target key end

     0   :  { %16 = vsyncpa [#allocation3], 0  ;;  %s3118_s0 = inlined_call_operand.hbm [shape: bf16[8,768], index: 0, kind: input, shape index: {}]   ;;  %s3119_s1 = inlined_call_operand.hbm [shape: bf16[768,384], index: 1, kind: input, shape index: {}]   ;;  %s3120_s2 = inlined_call_operand.vmem [shape: f32[1,384], index: 2, kind: input, shape index: {}]   ;;  %s3121_s3 = inlined_call_operand.hbm [shape: bf16[384,256], index: 3, kind: input, shape index: {}]   ;;  %s3122_s4 = inlined_call_operand.vmem [shape: f32[1,256], index: 4, kind: input, shape index: {}]   ;;  %s3123_s5 = inlined_call_operand.vmem [shape: f32[1,256], index: 5, kind: input, shape index: {}]   ;;  %s3124_s6 = inlined_call_operand.vmem [shape: f32[1,256], index: 6, kind: input, shape index: {}]   ;;  %s3125_s7 = inlined_call_operand.hbm [shape: bf16[256,128], index: 7, kind: input, shape index: {}]   ;;  %s3126_s8 = inlined_call_operand.vmem [shape: f32[1,128], index: 8, kind: input, shape index: {}]   ;;  %s3127_s9 = inlined_call_operand.hbm [shape: f32[128,128], index: 9, kind: input, shape index: {}]   ;;  %s3128_s10 = inlined_call_operand.vmem [shape: f32[1,128], index: 10, kind: input, shape index: {}]   ;;  %s3129_s11 = inlined_call_operand.hbm [shape: f32[8,128], index: 11, kind: output, shape index: {}]  }
   0x1   :  { %17 = vsyncpa [#allocation6], 0 }
   0x2   :  { %18 = vsyncpa [#allocation9], 0 }
   0x3   :  { %19 = vsyncpa [#allocation4], 0  ;;  %s2909_s17 = smov [#allocation5]   ;;  %s2769_s21 = scalar_lea.hbm %s3119_s1, 18432 }
   0x4   :  { %s35_s18 = sshll.u32 %s2909_s17, 4  ;;  %p2770_p0 = scmp.ne.s32.totalorder %s3119_s1, %s2769_s21  ;;  %s36_s18 = int_to_ptr.vmem [resolvable:$true] %s35_s18 }
   0x5   :  { %p2773_p1 = scmp.lt.u32.totalorder %s2769_s21, %s3119_s1 }
   0x7   :  { %p2775_p2 = pnand %p2773_p1, %p2770_p0 }
   0x9   :  { %2778 = shalt.err (!%p2775_p2)
}
   0xa   :  { %s2779_s26 = scalar_lea.vmem %s36_s18, 18432  ;;  %p2784_p4 = scmp.lt.s32.totalorder %s36_s18, %s36_s18 }
   0xb   :  { %p2780_p3 = scmp.ne.s32.totalorder %s36_s18, %s2779_s26  ;;  %p2785_p5 = scmp.lt.s32.totalorder %s2779_s26, %s2779_s26 }
   0xd   :  { %p2786_p6 = por %p2785_p5, %p2784_p4 }
   0xf   :  { %p2787_p7 = pnand %p2786_p6, %p2780_p3 }
  0x11   :  { %2790 = shalt.err (!%p2787_p7)
}
  0x12   :  { %s2910_s27 = smov 192   ;;  %s2911_s28 = smov 12  }
  0x13   :  { %41 = dma.hbm_to_vmem [thread:$0]  %s3119_s1, 18432, %s36_s18, [#allocation6], %s2910_s27, %s2910_s27, %s2911_s28  }
  0x14   :  { %s2912_s12 = smov [#allocation8]   ;;  %s2791_s16 = scalar_lea.hbm %s3125_s7, 2048 }
  0x15   :  { %s67_s13 = sshll.u32 %s2912_s12, 4  ;;  %p2792_p8 = scmp.ne.s32.totalorder %s3125_s7, %s2791_s16  ;;  %s68_s13 = int_to_ptr.vmem [resolvable:$true] %s67_s13 }
  0x16   :  { %p2795_p9 = scmp.lt.u32.totalorder %s2791_s16, %s3125_s7 }
  0x18   :  { %p2797_p10 = pnand %p2795_p9, %p2792_p8 }
  0x1a   :  { %2800 = shalt.err (!%p2797_p10)
}
  0x1b   :  { %s2801_s22 = scalar_lea.vmem %s68_s13, 2048  ;;  %p2806_p12 = scmp.lt.s32.totalorder %s68_s13, %s68_s13 }
  0x1c   :  { %p2802_p11 = scmp.ne.s32.totalorder %s68_s13, %s2801_s22  ;;  %p2807_p13 = scmp.lt.s32.totalorder %s2801_s22, %s2801_s22 }
  0x1e   :  { %p2808_p0 = por %p2807_p13, %p2806_p12 }
  0x20   :  { %p2809_p1 = pnand %p2808_p0, %p2802_p11 }
  0x22   :  { %2812 = shalt.err (!%p2809_p1)
}
  0x23   :  { %s2913_s1 = smov 64   ;;  %s2914_s18 = smov 4  }
  0x24   :  { %73 = dma.hbm_to_vmem [thread:$0]  %s3125_s7, 2048, %s68_s13, [#allocation9], %s2913_s1, %s2913_s1, %s2914_s18  }
  0x25   :  { %s2915_s25 = smov [#allocation2]   ;;  %s2916_s27 = smov [#allocation7]  }
  0x26   :  { %s26_s26 = sshll.u32 %s2915_s25, 4  ;;  %s49_s28 = sshll.u32 %s2916_s27, 4  ;;  %s27_s26 = int_to_ptr.vmem [resolvable:$true] %s26_s26  ;;  %s3009_s28 = int_to_ptr.vmem [resolvable:$true] %s49_s28 }
  0x27   :  { %s2813_s12 = scalar_lea.hbm %s3118_s0, 384 }
  0x28   :  { %p2814_p2 = scmp.ne.s32.totalorder %s3118_s0, %s2813_s12  ;;  %p2817_p3 = scmp.lt.u32.totalorder %s2813_s12, %s3118_s0 }
  0x2a   :  { %p2819_p4 = pnand %p2817_p3, %p2814_p2 }
  0x2c   :  { %2822 = shalt.err (!%p2819_p4)
}
  0x2d   :  { %s2823_s7 = scalar_lea.vmem %s27_s26, 384  ;;  %p2828_p6 = scmp.lt.s32.totalorder %s27_s26, %s27_s26 }
  0x2e   :  { %p2824_p5 = scmp.ne.s32.totalorder %s27_s26, %s2823_s7  ;;  %p2829_p7 = scmp.lt.s32.totalorder %s2823_s7, %s2823_s7 }
  0x30   :  { %p2830_p8 = por %p2829_p7, %p2828_p6 }
  0x32   :  { %p2831_p9 = pnand %p2830_p8, %p2824_p5 }
  0x34   :  { %2834 = shalt.err (!%p2831_p9)
}
  0x35   :  { %29 = dma.hbm_to_vmem [thread:$0]  %s3118_s0, 384, %s27_s26, [#allocation3]  }
  0x36   :  { %s2835_s22 = scalar_lea.hbm %s3121_s3, 6144 }
  0x37   :  { %p2836_p10 = scmp.ne.s32.totalorder %s3121_s3, %s2835_s22  ;;  %p2839_p11 = scmp.lt.u32.totalorder %s2835_s22, %s3121_s3 }
  0x39   :  { %p2841_p12 = pnand %p2839_p11, %p2836_p10 }
  0x3b   :  { %2844 = shalt.err (!%p2841_p12)
}
  0x3c   :  { %s2845_s25 = scalar_lea.vmem %s3009_s28, 6144  ;;  %p2850_p0 = scmp.lt.s32.totalorder %s3009_s28, %s3009_s28 }
  0x3d   :  { %p2846_p13 = scmp.ne.s32.totalorder %s3009_s28, %s2845_s25  ;;  %p2851_p1 = scmp.lt.s32.totalorder %s2845_s25, %s2845_s25 }
  0x3f   :  { %p2852_p2 = por %p2851_p1, %p2850_p0 }
  0x41   :  { %p2853_p3 = pnand %p2852_p2, %p2846_p13 }
  0x43   :  { %2856 = shalt.err (!%p2853_p3)
}
  0x44   :  { %s2917_s0 = smov 128   ;;  %s2918_s26 = smov 8  }
  0x45   :  { %55 = dma.hbm_to_vmem [thread:$0]  %s3121_s3, 6144, %s3009_s28, [#allocation6], %s2917_s0, %s2917_s0, %s2918_s26  }
  0x46   :  { %s2919_s30 = smov [#allocation10]   ;;  %s2857_s16 = scalar_lea.hbm %s3127_s9, 2048 }
  0x47   :  { %s81_s12 = sshll.u32 %s2919_s30, 4  ;;  %p2858_p4 = scmp.ne.s32.totalorder %s3127_s9, %s2857_s16  ;;  %s82_s12 = int_to_ptr.vmem [resolvable:$true] %s81_s12 }
  0x48   :  { %p2861_p5 = scmp.lt.u32.totalorder %s2857_s16, %s3127_s9 }
  0x4a   :  { %p2863_p6 = pnand %p2861_p5, %p2858_p4 }
  0x4c   :  { %2866 = shalt.err (!%p2863_p6)
}
  0x4d   :  { %s2867_s20 = scalar_lea.vmem %s82_s12, 2048  ;;  %p2872_p8 = scmp.lt.s32.totalorder %s82_s12, %s82_s12 }
  0x4e   :  { %p2868_p7 = scmp.ne.s32.totalorder %s82_s12, %s2867_s20  ;;  %p2873_p9 = scmp.lt.s32.totalorder %s2867_s20, %s2867_s20 }
  0x50   :  { %p2874_p10 = por %p2873_p9, %p2872_p8 }
  0x52   :  { %p2875_p11 = pnand %p2874_p10, %p2868_p7 }
  0x54   :  { %2878 = shalt.err (!%p2875_p11)
}
  0x55   :  { %87 = dma.hbm_to_vmem [thread:$0]  %s3127_s9, 2048, %s82_s12, [#allocation9], %s2917_s0, %s2917_s0, %s2918_s26  }
  0x56   :  { %2901 = dma.done.wait [#allocation3], 384  }
  0x57   :  { %2902 = vsyncadd [#allocation3], 4294966912 }
  0x58   :  { %2903 = dma.done.wait [#allocation6], 24576  }
  0x59   :  { %2904 = vsyncadd [#allocation6], 4294942720 }
  0x5a   :  { %2905 = dma.done.wait [#allocation9], 4096  }
  0x5b   :  { %2906 = vsyncadd [#allocation9], 4294963200  ;;  %v2481_v0 = vld [vmem:[#allocation5 + $0x4] ss:$12 sps:$4 sm:$0xff]   ;;  %v2483_v1 = vld [vmem:[#allocation5] ss:$12 sps:$4 sm:$0xff]  }
  0x5c   :  { %1107 = vmatprep.subr.bf16.mxu0 %v2481_v0  ;;  %v2484_v2 = vld [vmem:[#allocation5 + $0x1c] ss:$12 sps:$4 sm:$0xff]   ;;  %v2486_v3 = vld [vmem:[#allocation5 + $0x18] ss:$12 sps:$4 sm:$0xff]   ;;  %v2487_v4 = vld [vmem:[#allocation5 + $0x34] ss:$12 sps:$4 sm:$0xff]  }
  0x5d   :  { %1108 = vmatpush1.bf16.msra.mxu0 %v2483_v1  ;;  %v2489_v5 = vld [vmem:[#allocation5 + $0x30] ss:$12 sps:$4 sm:$0xff]   ;;  %v2490_v6 = vld [vmem:[#allocation5 + $0x4c] ss:$12 sps:$4 sm:$0xff]   ;;  %v2492_v7 = vld [vmem:[#allocation5 + $0x48] ss:$12 sps:$4 sm:$0xff]  }
  0x5e   :  { %1109 = vmatprep.subr.bf16.mxu0 %v2484_v2  ;;  %v2493_v8 = vld [vmem:[#allocation5 + $0x64] ss:$12 sps:$4 sm:$0xff]   ;;  %v2495_v9 = vld [vmem:[#allocation5 + $0x60] ss:$12 sps:$4 sm:$0xff]   ;;  %v2496_v10 = vld [vmem:[#allocation5 + $0x7c] ss:$12 sps:$4 sm:$0xff]  }
  0x5f   :  { %v2498_v11 = vld [vmem:[#allocation5 + $0x78] ss:$12 sps:$4 sm:$0xff]   ;;  %v2499_v12 = vld [vmem:[#allocation5 + $0x94] ss:$12 sps:$4 sm:$0xff]   ;;  %v3052_v13 = vld [vmem:[#allocation2] sm:$0xff]  ;;  %vm2922_vm0 = vmmov 0  }
  0x60   :  { %v2501_v14 = vld [vmem:[#allocation5 + $0x90] ss:$12 sps:$4 sm:$0xff]   ;;  %v2502_v15 = vld [vmem:[#allocation5 + $0xac] ss:$12 sps:$4 sm:$0xff]   ;;  %v2070_v16 = vcombine.high %v3052_v13, %v3052_v13  ;;  %v2534_v17 = vld [vmem:[#allocation5 + $0xc8] ss:$12 sps:$4 sm:$0xff]   ;;  %v2069_v50 = vcombine.low %v3052_v13, %v3052_v13 }
  0x61   :  { %1110 = vmatpush1.bf16.msra.mxu0 %v2486_v3  ;;  %v2535_v18 = vld [vmem:[#allocation5 + $0x8] ss:$12 sps:$4 sm:$0xff]   ;;  %2285 = vmatprep.subr.bf16.mxu1 %v2534_v17  ;;  %v2505_v20 = vld [vmem:[#allocation5 + $0xc4] ss:$12 sps:$4 sm:$0xff]   ;;  %v2539_v21 = vld [vmem:[#allocation5 + $0xe0] ss:$12 sps:$4 sm:$0xff]  }
  0x62   :  { %1111 = vmatprep.subr.bf16.mxu0 %v2487_v4  ;;  %1139 = vmatprep.mubr.bf16.mxu0 %v2070_v16  ;;  %v2504_v19 = vld [vmem:[#allocation5 + $0xa8] ss:$12 sps:$4 sm:$0xff]   ;;  %v2540_v22 = vld [vmem:[#allocation5 + $0x20] ss:$12 sps:$4 sm:$0xff]   ;;  %v2544_v24 = vld [vmem:[#allocation5 + $0xf8] ss:$12 sps:$4 sm:$0xff]  }
  0x63   :  { %1262 = vmatprep.mubr.bf16.mxu1 %v2070_v16  ;;  %2286 = vmatpush3.bf16.msra.mxu1 %v2535_v18  ;;  %v2507_v23 = vld [vmem:[#allocation5 + $0xc0] ss:$12 sps:$4 sm:$0xff]   ;;  %v2545_v25 = vld [vmem:[#allocation5 + $0x38] ss:$12 sps:$4 sm:$0xff]   ;;  %v2508_v26 = vld [vmem:[#allocation5 + $0xdc] ss:$12 sps:$4 sm:$0xff]  }
  0x64   :  { %2287 = vmatprep.subr.bf16.mxu1 %v2539_v21  ;;  %v2549_v27 = vld [vmem:[#allocation5 + $0x110] ss:$12 sps:$4 sm:$0xff]   ;;  %v2510_v29 = vld [vmem:[#allocation5 + $0xd8] ss:$12 sps:$4 sm:$0xff]   ;;  %v2511_v30 = vld [vmem:[#allocation5 + $0xf4] ss:$12 sps:$4 sm:$0xff]  }
  0x65   :  { %1112 = vmatpush1.bf16.msra.mxu0 %v2489_v5  ;;  %v2550_v28 = vld [vmem:[#allocation5 + $0x50] ss:$12 sps:$4 sm:$0xff]   ;;  %v2554_v31 = vld [vmem:[#allocation5 + $0x128] ss:$12 sps:$4 sm:$0xff]   ;;  %v2514_v34 = vld [vmem:[#allocation5 + $0x10c] ss:$12 sps:$4 sm:$0xff]  }
  0x66   :  { %1113 = vmatprep.subr.bf16.mxu0 %v2490_v6  ;;  %v2555_v32 = vld [vmem:[#allocation5 + $0x68] ss:$12 sps:$4 sm:$0xff]   ;;  %v2513_v33 = vld [vmem:[#allocation5 + $0xf0] ss:$12 sps:$4 sm:$0xff]   ;;  %v2559_v35 = vld [vmem:[#allocation5 + $0x140] ss:$12 sps:$4 sm:$0xff]  }
  0x67   :  { %2288 = vmatpush3.bf16.msra.mxu1 %v2540_v22  ;;  %v2516_v36 = vld [vmem:[#allocation5 + $0x108] ss:$12 sps:$4 sm:$0xff]   ;;  %v2560_v37 = vld [vmem:[#allocation5 + $0x80] ss:$12 sps:$4 sm:$0xff]   ;;  %v2564_v38 = vld [vmem:[#allocation5 + $0x158] ss:$12 sps:$4 sm:$0xff]  }
  0x68   :  { %2289 = vmatprep.subr.bf16.mxu1 %v2544_v24  ;;  %v2517_v39 = vld [vmem:[#allocation5 + $0x124] ss:$12 sps:$4 sm:$0xff]   ;;  %v2519_v40 = vld [vmem:[#allocation5 + $0x120] ss:$12 sps:$4 sm:$0xff]   ;;  %v2520_v43 = vld [vmem:[#allocation5 + $0x13c] ss:$12 sps:$4 sm:$0xff]  }
  0x69   :  { %1114 = vmatpush1.bf16.msra.mxu0 %v2492_v7  ;;  %v2565_v41 = vld [vmem:[#allocation5 + $0x98] ss:$12 sps:$4 sm:$0xff]   ;;  %v2569_v42 = vld [vmem:[#allocation5 + $0x170] ss:$12 sps:$4 sm:$0xff]   ;;  %v2574_v46 = vld [vmem:[#allocation5 + $0x248] ss:$12 sps:$4 sm:$0xff]  }
  0x6a   :  { %1115 = vmatprep.subr.bf16.mxu0 %v2493_v8  ;;  %v2522_v44 = vld [vmem:[#allocation5 + $0x138] ss:$12 sps:$4 sm:$0xff]   ;;  %v2570_v45 = vld [vmem:[#allocation5 + $0xb0] ss:$12 sps:$4 sm:$0xff]   ;;  %v2523_v47 = vld [vmem:[#allocation5 + $0x154] ss:$12 sps:$4 sm:$0xff]  }
  0x6b   :  { %2290 = vmatpush3.bf16.msra.mxu1 %v2545_v25  ;;  %v2525_v48 = vld [vmem:[#allocation5 + $0x150] ss:$12 sps:$4 sm:$0xff]   ;;  %v2575_v49 = vld [vmem:[#allocation5 + $0x188] ss:$12 sps:$4 sm:$0xff]   ;;  %v2579_v51 = vld [vmem:[#allocation5 + $0x260] ss:$12 sps:$4 sm:$0xff]  }
  0x6c   :  { %2291 = vmatprep.subr.bf16.mxu1 %v2549_v27  ;;  %v2526_v52 = vld [vmem:[#allocation5 + $0x16c] ss:$12 sps:$4 sm:$0xff]   ;;  %v2528_v54 = vld [vmem:[#allocation5 + $0x168] ss:$12 sps:$4 sm:$0xff]   ;;  %v2533_v56 = vld [vmem:[#allocation5 + $0x184] ss:$12 sps:$4 sm:$0xff]  }
  0x6d   :  { %1116 = vmatpush1.bf16.msra.mxu0 %v2495_v9  ;;  %v2580_v53 = vld [vmem:[#allocation5 + $0x1a0] ss:$12 sps:$4 sm:$0xff]   ;;  %v2584_v55 = vld [vmem:[#allocation5 + $0x278] ss:$12 sps:$4 sm:$0xff]   ;;  %v2589_v59 = vld [vmem:[#allocation5 + $0x290] ss:$12 sps:$4 sm:$0xff]  }
  0x6e   :  { %1117 = vmatprep.subr.bf16.mxu0 %v2496_v10  ;;  %v2531_v57 = vld [vmem:[#allocation5 + $0x180] ss:$12 sps:$4 sm:$0xff]   ;;  %v2585_v58 = vld [vmem:[#allocation5 + $0x1b8] ss:$12 sps:$4 sm:$0xff]   ;;  %v2538_v60 = vld [vmem:[#allocation5 + $0x19c] ss:$12 sps:$4 sm:$0xff]  }
  0x6f   :  { %2292 = vmatpush3.bf16.msra.mxu1 %v2550_v28  ;;  %v2536_v61 = vld [vmem:[#allocation5 + $0x198] ss:$12 sps:$4 sm:$0xff]   ;;  %v2590_v62 = vld [vmem:[#allocation5 + $0x1d0] ss:$12 sps:$4 sm:$0xff]   ;;  %v2594_v63 = vld [vmem:[#allocation5 + $0x2a8] ss:$12 sps:$4 sm:$0xff]  }
  0x70   :  { %2293 = vmatprep.subr.bf16.mxu1 %v2554_v31  ;;  %v2543_v0 = vld [vmem:[#allocation5 + $0x1b4] ss:$12 sps:$4 sm:$0xff]   ;;  %v2541_v1 = vld [vmem:[#allocation5 + $0x1b0] ss:$12 sps:$4 sm:$0xff]   ;;  %v2548_v4 = vld [vmem:[#allocation5 + $0x1cc] ss:$12 sps:$4 sm:$0xff]  }
  0x71   :  { %1118 = vmatpush1.bf16.msra.mxu0 %v2498_v11  ;;  %v2595_v2 = vld [vmem:[#allocation5 + $0x1e8] ss:$12 sps:$4 sm:$0xff]   ;;  %v2599_v3 = vld [vmem:[#allocation5 + $0x2c0] ss:$12 sps:$4 sm:$0xff]   ;;  %v2604_v7 = vld [vmem:[#allocation5 + $0x2d8] ss:$12 sps:$4 sm:$0xff]  }
  0x72   :  { %1119 = vmatprep.subr.bf16.mxu0 %v2499_v12  ;;  %v2546_v5 = vld [vmem:[#allocation5 + $0x1c8] ss:$12 sps:$4 sm:$0xff]   ;;  %v2600_v6 = vld [vmem:[#allocation5 + $0x200] ss:$12 sps:$4 sm:$0xff]   ;;  %v2553_v9 = vld [vmem:[#allocation5 + $0x1e4] ss:$12 sps:$4 sm:$0xff]  }
  0x73   :  { %2294 = vmatpush3.bf16.msra.mxu1 %v2555_v32  ;;  %v107_v8 = vld [vmem:[#allocation2 + $0x8] sm:$0xff]  ;;  %v2605_v11 = vld [vmem:[#allocation5 + $0x218] ss:$12 sps:$4 sm:$0xff]   ;;  %v2551_v12 = vld [vmem:[#allocation5 + $0x1e0] ss:$12 sps:$4 sm:$0xff]   ;;  %s2924_s0 = smov [#allocation11]  }
  0x74   :  { %2295 = vmatprep.subr.bf16.mxu1 %v2559_v35  ;;  %v2072_v10 = vcombine.high %v107_v8, %v107_v8  ;;  %v2609_v13 = vld [vmem:[#allocation5 + $0x2f0] ss:$12 sps:$4 sm:$0xff]   ;;  %v2616_v17 = vld [vmem:[#allocation5 + $0x3c8] ss:$12 sps:$4 sm:$0xff]   ;;  %v3058_v21 = vcombine.low %v107_v8, %v107_v8  ;;  %v2621_v22 = vld [vmem:[#allocation5 + $0x3e0] ss:$12 sps:$4 sm:$0xff]  }
  0x75   :  { %1120 = vmatpush1.bf16.msra.mxu0 %v2501_v14  ;;  %v2558_v14 = vld [vmem:[#allocation5 + $0x1fc] ss:$12 sps:$4 sm:$0xff]   ;;  %v2563_v18 = vld [vmem:[#allocation5 + $0x214] ss:$12 sps:$4 sm:$0xff]   ;;  %v2573_v27 = vld [vmem:[#allocation5 + $0x244] ss:$12 sps:$4 sm:$0xff]  }
  0x76   :  { %1121 = vmatprep.subr.bf16.mxu0 %v2502_v15  ;;  %v2556_v15 = vld [vmem:[#allocation5 + $0x1f8] ss:$12 sps:$4 sm:$0xff]   ;;  %v2610_v16 = vld [vmem:[#allocation5 + $0x230] ss:$12 sps:$4 sm:$0xff]   ;;  %v2566_v24 = vld [vmem:[#allocation5 + $0x228] ss:$12 sps:$4 sm:$0xff]  }
  0x77   :  { %2296 = vmatpush3.bf16.msra.mxu1 %v2560_v37  ;;  %v2622_v25 = vld [vmem:[#allocation5 + $0x320] ss:$12 sps:$4 sm:$0xff]   ;;  %v2578_v31 = vld [vmem:[#allocation5 + $0x25c] ss:$12 sps:$4 sm:$0xff]   ;;  %s2058_s26 = sshll.u32 %s2924_s0, 4  ;;  %s2059_s26 = int_to_ptr.vmem [resolvable:$true] %s2058_s26 }
  0x78   :  { %2297 = vmatprep.subr.bf16.mxu1 %v2564_v38  ;;  %v2571_v28 = vld [vmem:[#allocation5 + $0x240] ss:$12 sps:$4 sm:$0xff]   ;;  %v2632_v32 = vld [vmem:[#allocation5 + $0x350] ss:$12 sps:$4 sm:$0xff]   ;;  %v2637_v37 = vld [vmem:[#allocation5 + $0x368] ss:$12 sps:$4 sm:$0xff]   ;;  %p2884_p13 = scmp.lt.s32.totalorder %s2059_s26, %s2059_s26 }
  0x79   :  { %1122 = vmatpush1.bf16.msra.mxu0 %v2504_v19  ;;  %v2561_v19 = vld [vmem:[#allocation5 + $0x210] ss:$12 sps:$4 sm:$0xff]   ;;  %v2583_v35 = vld [vmem:[#allocation5 + $0x274] ss:$12 sps:$4 sm:$0xff]   ;;  %s2879_s27 = scalar_lea.vmem %s2059_s26, 128 }
  0x7a   :  { %1123 = vmatprep.subr.bf16.mxu0 %v2505_v20  ;;  %v2617_v20 = vld [vmem:[#allocation5 + $0x308] ss:$12 sps:$4 sm:$0xff]   ;;  %v2641_v38 = vld [vmem:[#allocation5 + $0x440] ss:$12 sps:$4 sm:$0xff]   ;;  %v2623_v8 = vld [vmem:[#allocation5 + $0x330] ss:$12 sps:$4 sm:$0xff]   ;;  %p2880_p12 = scmp.ne.s32.totalorder %s2059_s26, %s2879_s27  ;;  %p2885_p0 = scmp.lt.s32.totalorder %s2879_s27, %s2879_s27 }
  0x7b   :  { %2298 = vmatpush3.bf16.msra.mxu1 %v2565_v41 }
  0x7c   :  { %2299 = vmatprep.subr.bf16.mxu1 %v2569_v42  ;;  %v2642_v42 = vld [vmem:[#allocation5 + $0x380] ss:$12 sps:$4 sm:$0xff]   ;;  %p2886_p1 = por %p2885_p0, %p2884_p13 }
  0x7d   :  { %1124 = vmatpush1.bf16.msra.mxu0 %v2507_v23  ;;  %v2568_v23 = vld [vmem:[#allocation5 + $0x22c] ss:$12 sps:$4 sm:$0xff]  }
  0x7e   :  { %1125 = vmatprep.subr.bf16.mxu0 %v2508_v26  ;;  %v2626_v26 = vld [vmem:[#allocation5 + $0x3f8] ss:$12 sps:$4 sm:$0xff]   ;;  %p2887_p2 = pnand %p2886_p1, %p2880_p12 }
  0x7f   :  { %2300 = vmatpush3.bf16.msra.mxu1 %v2570_v45  ;;  %v2593_v45 = vld [vmem:[#allocation5 + $0x2a4] ss:$12 sps:$4 sm:$0xff]  }
  0x80   :  { %2307 = vmatprep.subr.bf16.mxu1 %v2574_v46  ;;  %v2647_v46 = vld [vmem:[#allocation5 + $0x398] ss:$12 sps:$4 sm:$0xff]  }
  0x81   :  { %1126 = vmatpush1.bf16.msra.mxu0 %v2510_v29  ;;  %v2627_v29 = vld [vmem:[#allocation5 + $0x338] ss:$12 sps:$4 sm:$0xff]  }
  0x82   :  { %1127 = vmatprep.subr.bf16.mxu0 %v2511_v30  ;;  %1263 = vmatmul.mubr.bf16.vlgmr.msra.gmra.mrb[0].mxu1 %v2069_v50  ;;  %v2631_v30 = vld [vmem:[#allocation5 + $0x410] ss:$12 sps:$4 sm:$0xff]  }
  0x83   :  { %2308 = vmatpush3.bf16.msra.mxu1 %v2575_v49  ;;  %1302 = vmatprep.mubr.bf16.mxu1 %v2072_v10  ;;  %v2598_v49 = vld [vmem:[#allocation5 + $0x2bc] ss:$12 sps:$4 sm:$0xff]  }
  0x84   :  { %2309 = vmatprep.subr.bf16.mxu1 %v2579_v51  ;;  %v2596_v51 = vld [vmem:[#allocation5 + $0x2b8] ss:$12 sps:$4 sm:$0xff]  }
  0x85   :  { %1128 = vmatpush1.bf16.msra.mxu0 %v2513_v33  ;;  %v2576_v33 = vld [vmem:[#allocation5 + $0x258] ss:$12 sps:$4 sm:$0xff]  }
  0x86   :  { %1129 = vmatprep.subr.bf16.mxu0 %v2514_v34  ;;  %v2636_v34 = vld [vmem:[#allocation5 + $0x428] ss:$12 sps:$4 sm:$0xff]  }
  0x87   :  { %2310 = vmatpush3.bf16.msra.mxu1 %v2580_v53  ;;  %v2603_v53 = vld [vmem:[#allocation5 + $0x2d4] ss:$12 sps:$4 sm:$0xff]  }
  0x88   :  { %2311 = vmatprep.subr.bf16.mxu1 %v2584_v55 }
  0x89   :  { %1130 = vmatpush1.bf16.msra.mxu0 %v2516_v36  ;;  %v2581_v36 = vld [vmem:[#allocation5 + $0x270] ss:$12 sps:$4 sm:$0xff]  }
  0x8a   :  { %1131 = vmatprep.subr.bf16.mxu0 %v2517_v39  ;;  %v108_v39 = vld [vmem:[#allocation2 + $0x10] sm:$0xff] }
  0x8b   :  { %2312 = vmatpush3.bf16.msra.mxu1 %v2585_v58  ;;  %v2074_v41 = vcombine.high %v108_v39, %v108_v39  ;;  %v3061_v55 = vcombine.low %v108_v39, %v108_v39  ;;  %v2684_v58 = vld [vmem:[#allocation7 + $0x14] ss:$8 sps:$4 sm:$0xff]   ;;  %v2700_v39 = vld [vmem:[#allocation7 + $0x70] ss:$8 sps:$4 sm:$0xff]  }
  0x8c   :  { %2313 = vmatprep.subr.bf16.mxu1 %v2589_v59  ;;  %v2682_v59 = vld [vmem:[#allocation7 + $0x10] ss:$8 sps:$4 sm:$0xff]  }
  0x8d   :  { %1132 = vmatpush1.bf16.msra.mxu0 %v2519_v40  ;;  %v2588_v40 = vld [vmem:[#allocation5 + $0x28c] ss:$12 sps:$4 sm:$0xff]  }
  0x8e   :  { %1133 = vmatprep.subr.bf16.mxu0 %v2520_v43  ;;  %v2586_v43 = vld [vmem:[#allocation5 + $0x288] ss:$12 sps:$4 sm:$0xff]  }
  0x8f   :  { %2314 = vmatpush3.bf16.msra.mxu1 %v2590_v62  ;;  %v2615_v62 = vld [vmem:[#allocation5 + $0x304] ss:$12 sps:$4 sm:$0xff]  }
  0x90   :  { %2315 = vmatprep.subr.bf16.mxu1 %v2594_v63  ;;  %v2685_v63 = vld [vmem:[#allocation7 + $0x20] ss:$8 sps:$4 sm:$0xff]  }
  0x91   :  { %1134 = vmatpush1.bf16.msra.mxu0 %v2522_v44  ;;  %v2646_v44 = vld [vmem:[#allocation5 + $0x458] ss:$12 sps:$4 sm:$0xff]  }
  0x92   :  { %1135 = vmatprep.subr.bf16.mxu0 %v2523_v47  ;;  %v2591_v47 = vld [vmem:[#allocation5 + $0x2a0] ss:$12 sps:$4 sm:$0xff]  }
  0x93   :  { %2316 = vmatpush3.bf16.msra.mxu1 %v2595_v2  ;;  %v2690_v2 = vld [vmem:[#allocation7 + $0x34] ss:$8 sps:$4 sm:$0xff]  }
  0x94   :  { %2317 = vmatprep.subr.bf16.mxu1 %v2599_v3  ;;  %v2688_v3 = vld [vmem:[#allocation7 + $0x30] ss:$8 sps:$4 sm:$0xff]  }
  0x95   :  { %1136 = vmatpush1.bf16.msra.mxu0 %v2525_v48  ;;  %v2651_v48 = vld [vmem:[#allocation5 + $0x470] ss:$12 sps:$4 sm:$0xff]  }
  0x96   :  { %1137 = vmatprep.subr.bf16.mxu0 %v2526_v52  ;;  %v2681_v52 = vld [vmem:[#allocation7 + $0x4] ss:$8 sps:$4 sm:$0xff]  }
  0x97   :  { %2318 = vmatpush3.bf16.msra.mxu1 %v2600_v6  ;;  %v2625_v6 = vld [vmem:[#allocation5 + $0x334] ss:$12 sps:$4 sm:$0xff]  }
  0x98   :  { %2319 = vmatprep.subr.bf16.mxu1 %v2604_v7  ;;  %v2691_v7 = vld [vmem:[#allocation7 + $0x40] ss:$8 sps:$4 sm:$0xff]  }
  0x99   :  { %1138 = vmatpush1.bf16.msra.mxu0 %v2528_v54  ;;  %v2601_v54 = vld [vmem:[#allocation5 + $0x2d0] ss:$12 sps:$4 sm:$0xff]  }
  0x9a   :  { %1148 = vmatprep.subr.bf16.mxu0 %v2533_v56  ;;  %v2679_v56 = vld [vmem:[#allocation7] ss:$8 sps:$4 sm:$0xff]  }
  0x9b   :  { %2320 = vmatpush3.bf16.msra.mxu1 %v2605_v11  ;;  %v2635_v11 = vld [vmem:[#allocation5 + $0x364] ss:$12 sps:$4 sm:$0xff]  }
  0x9c   :  { %1140 = vmatmul.mubr.bf16.vlgmr.msra.gmra.mrb[0].mxu0 %v2069_v50  ;;  %2321 = vmatprep.subr.bf16.mxu1 %v2609_v13  ;;  %v2652_v50 = vld [vmem:[#allocation5 + $0x3b0] ss:$12 sps:$4 sm:$0xff]  }
  0x9d   :  { %1149 = vmatpush1.bf16.msra.mxu0 %v2531_v57  ;;  %1180 = vmatprep.mubr.bf16.mxu0 %v2072_v10  ;;  %v2608_v57 = vld [vmem:[#allocation5 + $0x2ec] ss:$12 sps:$4 sm:$0xff]   ;;  %v2628_v10 = vld [vmem:[#allocation5 + $0x348] ss:$12 sps:$4 sm:$0xff]  }
  0x9e   :  { %1150 = vmatprep.subr.bf16.mxu0 %v2538_v60  ;;  %v2606_v60 = vld [vmem:[#allocation5 + $0x2e8] ss:$12 sps:$4 sm:$0xff]  }
  0x9f   :  { %2322 = vmatpush3.bf16.msra.mxu1 %v2610_v16  ;;  %v2696_v13 = vld [vmem:[#allocation7 + $0x54] ss:$8 sps:$4 sm:$0xff]   ;;  %v2638_v16 = vld [vmem:[#allocation5 + $0x378] ss:$12 sps:$4 sm:$0xff]  }
  0xa0   :  { %2329 = vmatprep.subr.bf16.mxu1 %v2616_v17  ;;  %v2645_v17 = vld [vmem:[#allocation5 + $0x394] ss:$12 sps:$4 sm:$0xff]  }
  0xa1   :  { %1151 = vmatpush1.bf16.msra.mxu0 %v2536_v61  ;;  %v2687_v61 = vld [vmem:[#allocation7 + $0x24] ss:$8 sps:$4 sm:$0xff]  }
  0xa2   :  { %1152 = vmatprep.subr.bf16.mxu0 %v2543_v0  ;;  %1303 = vmatmul.mubr.bf16.vlgmr.msra.gmra.mrb[4].mxu1 %v3058_v21  ;;  %v2613_v0 = vld [vmem:[#allocation5 + $0x300] ss:$12 sps:$4 sm:$0xff]  }
  0xa3   :  { %2330 = vmatpush3.bf16.msra.mxu1 %v2617_v20  ;;  %1342 = vmatprep.mubr.bf16.mxu1 %v2074_v41  ;;  %v2648_v20 = vld [vmem:[#allocation5 + $0x3a8] ss:$12 sps:$4 sm:$0xff]  }
  0xa4   :  { %2331 = vmatprep.subr.bf16.mxu1 %v2621_v22  ;;  %v2653_v22 = vld [vmem:[#allocation5 + $0x3c0] ss:$12 sps:$4 sm:$0xff]  }
  0xa5   :  { %1153 = vmatpush1.bf16.msra.mxu0 %v2541_v1  ;;  %v2620_v1 = vld [vmem:[#allocation5 + $0x31c] ss:$12 sps:$4 sm:$0xff]  }
  0xa6   :  { %1154 = vmatprep.subr.bf16.mxu0 %v2548_v4  ;;  %v2618_v4 = vld [vmem:[#allocation5 + $0x318] ss:$12 sps:$4 sm:$0xff]  }
  0xa7   :  { %2332 = vmatpush3.bf16.msra.mxu1 %v2622_v25  ;;  %v2663_v25 = vld [vmem:[#allocation5 + $0x3f4] ss:$12 sps:$4 sm:$0xff]  }
  0xa8   :  { %2333 = vmatprep.subr.bf16.mxu1 %v2626_v26  ;;  %v2661_v26 = vld [vmem:[#allocation5 + $0x3f0] ss:$12 sps:$4 sm:$0xff]  }
  0xa9   :  { %1155 = vmatpush1.bf16.msra.mxu0 %v2546_v5  ;;  %v2693_v5 = vld [vmem:[#allocation7 + $0x44] ss:$8 sps:$4 sm:$0xff]  }
  0xaa   :  { %1156 = vmatprep.subr.bf16.mxu0 %v2553_v9  ;;  %v2630_v9 = vld [vmem:[#allocation5 + $0x34c] ss:$12 sps:$4 sm:$0xff]  }
  0xab   :  { %2334 = vmatpush3.bf16.msra.mxu1 %v2627_v29  ;;  %v2669_v29 = vld [vmem:[#allocation5 + $0x424] ss:$12 sps:$4 sm:$0xff]  }
  0xac   :  { %2335 = vmatprep.subr.bf16.mxu1 %v2631_v30  ;;  %v2697_v30 = vld [vmem:[#allocation7 + $0x60] ss:$8 sps:$4 sm:$0xff]  }
  0xad   :  { %1157 = vmatpush1.bf16.msra.mxu0 %v2551_v12  ;;  %v2694_v12 = vld [vmem:[#allocation7 + $0x50] ss:$8 sps:$4 sm:$0xff]  }
  0xae   :  { %1158 = vmatprep.subr.bf16.mxu0 %v2558_v14  ;;  %v2633_v14 = vld [vmem:[#allocation5 + $0x360] ss:$12 sps:$4 sm:$0xff]  }
  0xaf   :  { %2336 = vmatpush3.bf16.msra.mxu1 %v2632_v32  ;;  %v2667_v32 = vld [vmem:[#allocation5 + $0x420] ss:$12 sps:$4 sm:$0xff]  }
  0xb0   :  { %2337 = vmatprep.subr.bf16.mxu1 %v2636_v34  ;;  %v2670_v34 = vld [vmem:[#allocation5 + $0x438] ss:$12 sps:$4 sm:$0xff]  }
  0xb1   :  { %1159 = vmatpush1.bf16.msra.mxu0 %v2556_v15  ;;  %v2640_v15 = vld [vmem:[#allocation5 + $0x37c] ss:$12 sps:$4 sm:$0xff]  }
  0xb2   :  { %1160 = vmatprep.subr.bf16.mxu0 %v2563_v18  ;;  %v2643_v18 = vld [vmem:[#allocation5 + $0x390] ss:$12 sps:$4 sm:$0xff]  }
  0xb3   :  { %2338 = vmatpush3.bf16.msra.mxu1 %v2637_v37  ;;  %v2678_v37 = vld [vmem:[#allocation5 + $0x46c] ss:$12 sps:$4 sm:$0xff]  }
  0xb4   :  { %2339 = vmatprep.subr.bf16.mxu1 %v2641_v38  ;;  %v2676_v38 = vld [vmem:[#allocation5 + $0x468] ss:$12 sps:$4 sm:$0xff]  }
  0xb5   :  { %1161 = vmatpush1.bf16.msra.mxu0 %v2561_v19  ;;  %v2650_v19 = vld [vmem:[#allocation5 + $0x3ac] ss:$12 sps:$4 sm:$0xff]  }
  0xb6   :  { %1162 = vmatprep.subr.bf16.mxu0 %v2568_v23  ;;  %v2660_v23 = vld [vmem:[#allocation5 + $0x3dc] ss:$12 sps:$4 sm:$0xff]  }
  0xb7   :  { %2340 = vmatpush3.bf16.msra.mxu1 %v2642_v42  ;;  %v2705_v42 = vld [vmem:[#allocation7 + $0x84] ss:$8 sps:$4 sm:$0xff]  }
  0xb8   :  { %2341 = vmatprep.subr.bf16.mxu1 %v2646_v44  ;;  %v2706_v44 = vld [vmem:[#allocation7 + $0x90] ss:$8 sps:$4 sm:$0xff]  }
  0xb9   :  { %1163 = vmatpush1.bf16.msra.mxu0 %v2566_v24  ;;  %v2658_v24 = vld [vmem:[#allocation5 + $0x3d8] ss:$12 sps:$4 sm:$0xff]  }
  0xba   :  { %1164 = vmatprep.subr.bf16.mxu0 %v2573_v27  ;;  %v2666_v27 = vld [vmem:[#allocation5 + $0x40c] ss:$12 sps:$4 sm:$0xff]  }
  0xbb   :  { %2342 = vmatpush3.bf16.msra.mxu1 %v2647_v46  ;;  %v2709_v46 = vld [vmem:[#allocation7 + $0xa0] ss:$8 sps:$4 sm:$0xff]  }
  0xbc   :  { %2343 = vmatprep.subr.bf16.mxu1 %v2651_v48  ;;  %v2712_v48 = vld [vmem:[#allocation7 + $0xb0] ss:$8 sps:$4 sm:$0xff]  }
  0xbd   :  { %1165 = vmatpush1.bf16.msra.mxu0 %v2571_v28  ;;  %v2664_v28 = vld [vmem:[#allocation5 + $0x408] ss:$12 sps:$4 sm:$0xff]  }
  0xbe   :  { %1166 = vmatprep.subr.bf16.mxu0 %v2578_v31  ;;  %v2699_v31 = vld [vmem:[#allocation7 + $0x64] ss:$8 sps:$4 sm:$0xff]  }
  0xbf   :  { %2344 = vmatpush3.bf16.msra.mxu1 %v2652_v50  ;;  %v2715_v50 = vld [vmem:[#allocation7 + $0xc0] ss:$8 sps:$4 sm:$0xff]  }
  0xc0   :  { %1653 = vmatprep.subr.bf16.mxu1 %v2681_v52  ;;  %v2718_v52 = vld [vmem:[#allocation7 + $0xd0] ss:$8 sps:$4 sm:$0xff]  }
  0xc1   :  { %1167 = vmatpush1.bf16.msra.mxu0 %v2576_v33  ;;  %v2672_v33 = vld [vmem:[#allocation5 + $0x43c] ss:$12 sps:$4 sm:$0xff]  }
  0xc2   :  { %1168 = vmatprep.subr.bf16.mxu0 %v2583_v35  ;;  %1343 = vmatmul.mubr.bf16.vlgmr.msra.gmra.mrb[8].mxu1 %v3061_v55  ;;  %v2675_v35 = vld [vmem:[#allocation5 + $0x454] ss:$12 sps:$4 sm:$0xff]  }
  0xc3   :  { %1654 = vmatpush1.bf16.msra.mxu1 %v2679_v56 }
  0xc4   :  { %1655 = vmatprep.subr.bf16.mxu1 %v2684_v58 }
  0xc5   :  { %1169 = vmatpush1.bf16.msra.mxu0 %v2581_v36  ;;  %v2673_v36 = vld [vmem:[#allocation5 + $0x450] ss:$12 sps:$4 sm:$0xff]  }
  0xc6   :  { %1170 = vmatprep.subr.bf16.mxu0 %v2588_v40  ;;  %v2702_v40 = vld [vmem:[#allocation7 + $0x74] ss:$8 sps:$4 sm:$0xff]  }
  0xc7   :  { %1656 = vmatpush1.bf16.msra.mxu1 %v2682_v59 }
  0xc8   :  { %1657 = vmatprep.subr.bf16.mxu1 %v2687_v61  ;;  %v2724_v61 = vld [vmem:[#allocation7 + $0xf0] ss:$8 sps:$4 sm:$0xff]  }
  0xc9   :  { %1171 = vmatpush1.bf16.msra.mxu0 %v2586_v43  ;;  %v2708_v43 = vld [vmem:[#allocation7 + $0x94] ss:$8 sps:$4 sm:$0xff]  }
  0xca   :  { %1172 = vmatprep.subr.bf16.mxu0 %v2593_v45  ;;  %v2711_v45 = vld [vmem:[#allocation7 + $0xa4] ss:$8 sps:$4 sm:$0xff]  }
  0xcb   :  { %1658 = vmatpush1.bf16.msra.mxu1 %v2685_v63  ;;  %v303_v63 = vlaneseq }
  0xcc   :  { %1659 = vmatprep.subr.bf16.mxu1 %v2690_v2  ;;  %v301_v2 = vld [vmem:[%s3120_s2] sm:$0x7] }
  0xcd   :  { %1173 = vmatpush1.bf16.msra.mxu0 %v2591_v47  ;;  %v2714_v47 = vld [vmem:[#allocation7 + $0xb4] ss:$8 sps:$4 sm:$0xff]  }
  0xce   :  { %1174 = vmatprep.subr.bf16.mxu0 %v2598_v49  ;;  %v2717_v49 = vld [vmem:[#allocation7 + $0xc4] ss:$8 sps:$4 sm:$0xff]  }
  0xcf   :  { %1660 = vmatpush1.bf16.msra.mxu1 %v2688_v3 }
  0xd0   :  { %1661 = vmatprep.subr.bf16.mxu1 %v2693_v5 }
  0xd1   :  { %1175 = vmatpush1.bf16.msra.mxu0 %v2596_v51  ;;  %v2720_v51 = vld [vmem:[#allocation7 + $0xd4] ss:$8 sps:$4 sm:$0xff]  }
  0xd2   :  { %1176 = vmatprep.subr.bf16.mxu0 %v2603_v53  ;;  %v2723_v53 = vld [vmem:[#allocation7 + $0xe4] ss:$8 sps:$4 sm:$0xff]  }
  0xd3   :  { %1662 = vmatpush1.bf16.msra.mxu1 %v2691_v7 }
  0xd4   :  { %1663 = vmatprep.subr.bf16.mxu1 %v2696_v13 }
  0xd5   :  { %1177 = vmatpush1.bf16.msra.mxu0 %v2601_v54  ;;  %v2721_v54 = vld [vmem:[#allocation7 + $0xe0] ss:$8 sps:$4 sm:$0xff]  }
  0xd6   :  { %1178 = vmatprep.subr.bf16.mxu0 %v2608_v57 }
  0xd7   :  { %1664 = vmatpush1.bf16.msra.mxu1 %v2694_v12 }
  0xd8   :  { %1665 = vmatprep.subr.bf16.mxu1 %v2699_v31  ;;  %v2730_v31 = vld [vmem:[#allocation7 + $0x110] ss:$8 sps:$4 sm:$0xff]  }
  0xd9   :  { %1179 = vmatpush1.bf16.msra.mxu0 %v2606_v60  ;;  %v2726_v60 = vld [vmem:[#allocation7 + $0xf4] ss:$8 sps:$4 sm:$0xff]  }
  0xda   :  { %1189 = vmatprep.subr.bf16.mxu0 %v2615_v62  ;;  %v2729_v62 = vld [vmem:[#allocation7 + $0x104] ss:$8 sps:$4 sm:$0xff]  }
  0xdb   :  { %1666 = vmatpush1.bf16.msra.mxu1 %v2697_v30  ;;  %v2732_v30 = vld [vmem:[#allocation7 + $0x114] ss:$8 sps:$4 sm:$0xff]  }
  0xdc   :  { %1181 = vmatmul.mubr.bf16.vlgmr.msra.gmra.mrb[0].mxu0 %v3058_v21  ;;  %v2655_v21 = vld [vmem:[#allocation5 + $0x3c4] ss:$12 sps:$4 sm:$0xff]   ;;  %1667 = vmatprep.subr.bf16.mxu1 %v2702_v40 }
  0xdd   :  { %1190 = vmatpush1.bf16.msra.mxu0 %v2613_v0  ;;  %1221 = vmatprep.mubr.bf16.mxu0 %v2074_v41  ;;  %v2703_v41 = vld [vmem:[#allocation7 + $0x80] ss:$8 sps:$4 sm:$0xff]   ;;  %v304_v0 = vshrl.u32 %v303_v63, 7  ;;  %v2742_v40 = vld [vmem:[#allocation7 + $0x150] ss:$8 sps:$4 sm:$0xff]  }
  0xde   :  { %1191 = vmatprep.subr.bf16.mxu0 %v2620_v1 }
  0xdf   :  { %1668 = vmatpush1.bf16.msra.mxu1 %v2700_v39  ;;  %v313_v1 = vsub.s32 2, %v304_v0  ;;  %v2744_v39 = vld [vmem:[#allocation7 + $0x154] ss:$8 sps:$4 sm:$0xff]  }
  0xe0   :  { %1669 = vmatprep.subr.bf16.mxu1 %v2705_v42  ;;  %v2745_v42 = vld [vmem:[#allocation7 + $0x160] ss:$8 sps:$4 sm:$0xff]  }
  0xe1   :  { %1192 = vmatpush1.bf16.msra.mxu0 %v2618_v4  ;;  %v314_v3 = vrot.slane %v301_v2, %v313_v1 }
  0xe2   :  { %1193 = vmatprep.subr.bf16.mxu0 %v2625_v6 }
  0xe3   :  { %1670 = vmatpush1.bf16.msra.mxu1 %v2703_v41  ;;  %v2747_v41 = vld [vmem:[#allocation7 + $0x164] ss:$8 sps:$4 sm:$0xff]  }
  0xe4   :  { %1671 = vmatprep.subr.bf16.mxu1 %v2708_v43  ;;  %v2750_v43 = vld [vmem:[#allocation7 + $0x174] ss:$8 sps:$4 sm:$0xff]  }
  0xe5   :  { %1194 = vmatpush1.bf16.msra.mxu0 %v2623_v8 }
  0xe6   :  { %1195 = vmatprep.subr.bf16.mxu0 %v2630_v9 }
  0xe7   :  { %1672 = vmatpush1.bf16.msra.mxu1 %v2706_v44  ;;  %v2748_v44 = vld [vmem:[#allocation7 + $0x170] ss:$8 sps:$4 sm:$0xff]  }
  0xe8   :  { %1673 = vmatprep.subr.bf16.mxu1 %v2711_v45 }
  0xe9   :  { %1196 = vmatpush1.bf16.msra.mxu0 %v2628_v10 }
  0xea   :  { %1197 = vmatprep.subr.bf16.mxu0 %v2635_v11 }
  0xeb   :  { %1674 = vmatpush1.bf16.msra.mxu1 %v2709_v46  ;;  %v1401_v46 = vld [vmem:[%s3122_s4] sm:$0x3] }
  0xec   :  { %1675 = vmatprep.subr.bf16.mxu1 %v2714_v47 }
  0xed   :  { %1198 = vmatpush1.bf16.msra.mxu0 %v2633_v14 }
  0xee   :  { %1199 = vmatprep.subr.bf16.mxu0 %v2640_v15 }
  0xef   :  { %1676 = vmatpush1.bf16.msra.mxu1 %v2712_v48 }
  0xf0   :  { %1677 = vmatprep.subr.bf16.mxu1 %v2717_v49 }
  0xf1   :  { %1200 = vmatpush1.bf16.msra.mxu0 %v2638_v16 }
  0xf2   :  { %1201 = vmatprep.subr.bf16.mxu0 %v2645_v17  ;;  %v3069_v17 = vsub.s32 0, %v304_v0 }
  0xf3   :  { %1678 = vmatpush1.bf16.msra.mxu1 %v2715_v50 }
  0xf4   :  { %1679 = vmatprep.subr.bf16.mxu1 %v2720_v51  ;;  %v1406_v47 = vrot.slane %v1401_v46, %v3069_v17 }
  0xf5   :  { %1202 = vmatpush1.bf16.msra.mxu0 %v2643_v18  ;;  %v3071_v18 = vsub.s32 1, %v304_v0 }
  0xf6   :  { %1203 = vmatprep.subr.bf16.mxu0 %v2650_v19  ;;  %v306_v19 = vrot.slane %v301_v2, %v3069_v17 }
  0xf7   :  { %1680 = vmatpush1.bf16.msra.mxu1 %v2718_v52  ;;  %v1410_v48 = vrot.slane %v1401_v46, %v3071_v18 }
  0xf8   :  { %1681 = vmatprep.subr.bf16.mxu1 %v2723_v53 }
  0xf9   :  { %1204 = vmatpush1.bf16.msra.mxu0 %v2648_v20  ;;  %v310_v20 = vrot.slane %v301_v2, %v3071_v18 }
  0xfa   :  { %1205 = vmatprep.subr.bf16.mxu0 %v2655_v21 }
  0xfb   :  { %1682 = vmatpush1.bf16.msra.mxu1 %v2721_v54 }
  0xfc   :  { %1683 = vmatprep.subr.bf16.mxu1 %v2726_v60 }
  0xfd   :  { %1206 = vmatpush1.bf16.msra.mxu0 %v2653_v22 }
  0xfe   :  { %1207 = vmatprep.subr.bf16.mxu0 %v2660_v23 }
  0xff   :  { %1684 = vmatpush1.bf16.msra.mxu1 %v2724_v61 }
 0x100   :  { %1694 = vmatprep.subr.bf16.mxu1 %v2729_v62 }
 0x101   :  { %1208 = vmatpush1.bf16.msra.mxu0 %v2658_v24 }
 0x102   :  { %1209 = vmatprep.subr.bf16.mxu0 %v2663_v25 }
 0x105   :  { %1210 = vmatpush1.bf16.msra.mxu0 %v2661_v26 }
 0x106   :  { %1211 = vmatprep.subr.bf16.mxu0 %v2666_v27 }
 0x109   :  { %1212 = vmatpush1.bf16.msra.mxu0 %v2664_v28  ;;  %v2727_v28 = vld [vmem:[#allocation7 + $0x100] ss:$8 sps:$4 sm:$0xff]  }
 0x10a   :  { %1213 = vmatprep.subr.bf16.mxu0 %v2669_v29 }
 0x10d   :  { %1214 = vmatpush1.bf16.msra.mxu0 %v2667_v32  ;;  %v2920_v32 = vmov 0  }
 0x10e   :  { %1215 = vmatprep.subr.bf16.mxu0 %v2672_v33  ;;  %v2735_v33 = vld [vmem:[#allocation7 + $0x124] ss:$8 sps:$4 sm:$0xff]  }
 0x111   :  { %1216 = vmatpush1.bf16.msra.mxu0 %v2670_v34  ;;  %v2733_v34 = vld [vmem:[#allocation7 + $0x120] ss:$8 sps:$4 sm:$0xff]  }
 0x112   :  { %1217 = vmatprep.subr.bf16.mxu0 %v2675_v35  ;;  %v2738_v35 = vld [vmem:[#allocation7 + $0x134] ss:$8 sps:$4 sm:$0xff]  }
 0x115   :  { %1218 = vmatpush1.bf16.msra.mxu0 %v2673_v36  ;;  %v2736_v36 = vld [vmem:[#allocation7 + $0x130] ss:$8 sps:$4 sm:$0xff]  }
 0x116   :  { %1219 = vmatprep.subr.bf16.mxu0 %v2678_v37  ;;  %v2741_v37 = vld [vmem:[#allocation7 + $0x144] ss:$8 sps:$4 sm:$0xff]  }
 0x119   :  { %1220 = vmatpush1.bf16.msra.mxu0 %v2676_v38  ;;  %v2739_v38 = vld [vmem:[#allocation7 + $0x140] ss:$8 sps:$4 sm:$0xff]  }
 0x11c   :  { %1222 = vmatmul.mubr.bf16.vlgmr.msra.gmra.mrb[0].mxu0 %v3061_v55 }
 0x155   :  { %v2301_v55 = vpop.f32.mrb[0].mxu1 }
 0x156   :  { %v2302_v56 = vpop.f32.mrb[1].mxu1 }
 0x157   :  { %v2303_v57 = vadd.f32 %v2302_v56, %v2301_v55  ;;  %v2304_v58 = vpop.f32.mrb[2].mxu1  ;;  %v2751_v56 = vld [vmem:[#allocation8 + $0x40] sm:$0xff]  }
 0x158   :  { %v2305_v59 = vpop.f32.mrb[3].mxu1  ;;  %v2753_v58 = vld [vmem:[#allocation8 + $0x48] sm:$0xff]   ;;  %2351 = vmatprep.subr.bf16.mxu0 %v2751_v56 }
 0x159   :  { %v1265_v4 = vadd.f32 %v2303_v57, %v314_v3  ;;  %v2752_v57 = vld [vmem:[#allocation8] sm:$0xff]   ;;  %v2754_v59 = vld [vmem:[#allocation8 + $0x8] sm:$0xff]   ;;  %v2755_v3 = vld [vmem:[#allocation8 + $0x50] sm:$0xff]  }
 0x15a   :  { %2352 = vmatpush3.bf16.msra.mxu0 %v2752_v57  ;;  %v1972_v57 = vld [vmem:[#allocation10 + $0x70] sm:$0xff] }
 0x15b   :  { %2353 = vmatprep.subr.bf16.mxu0 %v2753_v58  ;;  %v1973_v58 = vld [vmem:[#allocation10 + $0x78] sm:$0xff] }
 0x15e   :  { %2354 = vmatpush3.bf16.msra.mxu0 %v2754_v59  ;;  %v2447_v59 = vpack.c.bf16 %v1973_v58, %v1972_v57 }
 0x15f   :  { %2355 = vmatprep.subr.bf16.mxu0 %v2755_v3  ;;  %v2284_v3 = vld [vmem:[%s3128_s10] ss:$0 sm:$0xff] }
 0x175   :  { %v2323_v5 = vpop.f32.mrb[4].mxu1 }
 0x176   :  { %v2324_v6 = vpop.f32.mrb[5].mxu1 }
 0x177   :  { %v2325_v7 = vadd.f32 %v2324_v6, %v2323_v5  ;;  %v2326_v8 = vpop.f32.mrb[6].mxu1  ;;  %v2757_v5 = vld [vmem:[#allocation8 + $0x58] sm:$0xff]  }
 0x178   :  { %v2327_v9 = vpop.f32.mrb[7].mxu1  ;;  %v2758_v6 = vld [vmem:[#allocation8 + $0x18] sm:$0xff]   ;;  %v2760_v8 = vld [vmem:[#allocation8 + $0x20] sm:$0xff]  }
 0x179   :  { %v1305_v10 = vadd.f32 %v2325_v7, %v1265_v4  ;;  %v2756_v4 = vld [vmem:[#allocation8 + $0x10] sm:$0xff]   ;;  %v2759_v7 = vld [vmem:[#allocation8 + $0x60] sm:$0xff]   ;;  %v2761_v9 = vld [vmem:[#allocation8 + $0x68] sm:$0xff]  }
 0x17a   :  { %2356 = vmatpush3.bf16.msra.mxu0 %v2756_v4 }
 0x17b   :  { %2357 = vmatprep.subr.bf16.mxu0 %v2757_v5 }
 0x17e   :  { %2358 = vmatpush3.bf16.msra.mxu0 %v2758_v6 }
 0x17f   :  { %2359 = vmatprep.subr.bf16.mxu0 %v2759_v7 }
 0x182   :  { %2360 = vmatpush3.bf16.msra.mxu0 %v2760_v8 }
 0x183   :  { %2361 = vmatprep.subr.bf16.mxu0 %v2761_v9 }
 0x195   :  { %v2345_v11 = vpop.f32.mrb[8].mxu1 }
 0x196   :  { %v2346_v12 = vpop.f32.mrb[9].mxu1 }
 0x197   :  { %v2347_v13 = vadd.f32 %v2346_v12, %v2345_v11  ;;  %v2348_v14 = vpop.f32.mrb[10].mxu1  ;;  %v2763_v11 = vld [vmem:[#allocation8 + $0x70] sm:$0xff]  }
 0x198   :  { %v2349_v15 = vpop.f32.mrb[11].mxu1  ;;  %v2764_v12 = vld [vmem:[#allocation8 + $0x30] sm:$0xff]   ;;  %v2766_v14 = vld [vmem:[#allocation8 + $0x38] sm:$0xff]  }
 0x199   :  { %v1345_v16 = vadd.f32 %v2347_v13, %v1305_v10  ;;  %v2762_v10 = vld [vmem:[#allocation8 + $0x28] sm:$0xff]   ;;  %v2765_v13 = vld [vmem:[#allocation8 + $0x78] sm:$0xff]   ;;  %v1958_v15 = vld [vmem:[#allocation10] sm:$0xff] }
 0x19a   :  { %2362 = vmatpush3.bf16.msra.mxu0 %v2762_v10 }
 0x19b   :  { %v1352_v45 = vpack.c.bf16 %v1345_v16, %v1345_v16  ;;  %2363 = vmatprep.subr.bf16.mxu0 %v2763_v11  ;;  %v1959_v16 = vld [vmem:[#allocation10 + $0x8] sm:$0xff] }
 0x19e   :  { %2364 = vmatpush3.bf16.msra.mxu0 %v2764_v12 }
 0x19f   :  { %2365 = vmatprep.subr.bf16.mxu0 %v2765_v13 }
 0x1a2   :  { %2366 = vmatpush3.bf16.msra.mxu0 %v2766_v14 }
 0x1ef   :  { %v1223_v21 = vpop.f32.mrb[0].mxu0 }
 0x1f0   :  { %v2449_v22 = vadd.f32 %v1223_v21, %v306_v19  ;;  %v1225_v23 = vpop.f32.mrb[1].mxu0  ;;  %v1960_v19 = vld [vmem:[#allocation10 + $0x10] sm:$0xff]  ;;  %v2426_v21 = vpack.c.bf16 %v1959_v16, %v1958_v15 }
 0x1f1   :  { %v2450_v24 = vadd.f32 %v1225_v23, %v310_v20  ;;  %v1227_v25 = vpop.f32.mrb[2].mxu0  ;;  %v2921_v20 = vmov 0.0|0.0  }
 0x1f2   :  { %v1228_v26 = vpop.f32.mrb[3].mxu0  ;;  %v1350_v29 = vpack.c.bf16 %v2449_v22, %v2449_v22  ;;  %v1961_v22 = vld [vmem:[#allocation10 + $0x18] sm:$0xff]  ;;  %v1963_v25 = vld [vmem:[#allocation10 + $0x28] sm:$0xff] }
 0x1f3   :  { %v1351_v27 = vpack.c.bf16 %v2450_v24, %v2450_v24  ;;  %v2429_v23 = vpack.c.bf16 %v1961_v22, %v1960_v19  ;;  %v1962_v24 = vld [vmem:[#allocation10 + $0x20] sm:$0xff] }
 0x1f4   :  { %v2432_v26 = vpack.c.bf16 %v1963_v25, %v1962_v24 }
 0x1f5   :  { %1685 = vmatprep.mubr.bf16.mxu1 %v1351_v27  ;;  %v1964_v27 = vld [vmem:[#allocation10 + $0x30] sm:$0xff] }
 0x1f6   :  { %1686 = vmatmul.mubr.bf16.vlgmr.msra.gmra.mrb[12].mxu1 %v1350_v29 }
 0x1f7   :  { %1695 = vmatpush1.bf16.msra.mxu1 %v2727_v28  ;;  %1726 = vmatprep.mubr.bf16.mxu1 %v2920_v32  ;;  %v1965_v28 = vld [vmem:[#allocation10 + $0x38] sm:$0xff] }
 0x1f8   :  { %1696 = vmatprep.subr.bf16.mxu1 %v2732_v30  ;;  %v2435_v29 = vpack.c.bf16 %v1965_v28, %v1964_v27  ;;  %v1966_v30 = vld [vmem:[#allocation10 + $0x40] sm:$0xff] }
 0x1fb   :  { %1697 = vmatpush1.bf16.msra.mxu1 %v2730_v31  ;;  %v1967_v31 = vld [vmem:[#allocation10 + $0x48] sm:$0xff] }
 0x1fc   :  { %1698 = vmatprep.subr.bf16.mxu1 %v2735_v33  ;;  %v2438_v32 = vpack.c.bf16 %v1967_v31, %v1966_v30  ;;  %v1968_v33 = vld [vmem:[#allocation10 + $0x50] sm:$0xff] }
 0x1ff   :  { %1699 = vmatpush1.bf16.msra.mxu1 %v2733_v34  ;;  %v1969_v34 = vld [vmem:[#allocation10 + $0x58] sm:$0xff] }
 0x200   :  { %1700 = vmatprep.subr.bf16.mxu1 %v2738_v35  ;;  %v2441_v35 = vpack.c.bf16 %v1969_v34, %v1968_v33 }
 0x203   :  { %1701 = vmatpush1.bf16.msra.mxu1 %v2736_v36 }
 0x204   :  { %1702 = vmatprep.subr.bf16.mxu1 %v2741_v37 }
 0x207   :  { %1703 = vmatpush1.bf16.msra.mxu1 %v2739_v38 }
 0x208   :  { %1704 = vmatprep.subr.bf16.mxu1 %v2744_v39  ;;  %v1752_v39 = vld [vmem:[%s3123_s5] sm:$0x3] }
 0x20b   :  { %1705 = vmatpush1.bf16.msra.mxu1 %v2742_v40  ;;  %v1766_v40 = vld [vmem:[%s3124_s6] sm:$0x3] }
 0x20c   :  { %1706 = vmatprep.subr.bf16.mxu1 %v2747_v41  ;;  %v1757_v41 = vrot.slane %v1752_v39, %v3069_v17  ;;  %v1771_v46 = vrot.slane %v1766_v40, %v3069_v17  ;;  %v2923_v17 = vmov 0.0  }
 0x20f   :  { %1707 = vmatpush1.bf16.msra.mxu1 %v2745_v42  ;;  %v1761_v42 = vrot.slane %v1752_v39, %v3071_v18 }
 0x210   :  { %1708 = vmatprep.subr.bf16.mxu1 %v2750_v43 }
 0x213   :  { %1709 = vmatpush1.bf16.msra.mxu1 %v2748_v44 }
 0x214   :  { %2425 = vmatprep.subr.bf16.mxu1 %v2921_v20 }
 0x216   :  { %1727 = vmatmul.mubr.bf16.vlgmr.msra.gmra.mrb[12].mxu1 %v1352_v45 }
 0x217   :  { %2427 = vmatpush3.bf16.msra.mxu1 %v2426_v21  ;;  %2422 = vmatprep.mubr.msk.f32.mxu1 %vm2922_vm0, %v2923_v17 }
 0x218   :  { %2428 = vmatprep.subr.bf16.mxu1 %v2921_v20 }
 0x21b   :  { %2430 = vmatpush3.bf16.msra.mxu1 %v2429_v23 }
 0x21c   :  { %2431 = vmatprep.subr.bf16.mxu1 %v2921_v20 }
 0x21f   :  { %2433 = vmatpush3.bf16.msra.mxu1 %v2432_v26 }
 0x220   :  { %2434 = vmatprep.subr.bf16.mxu1 %v2921_v20 }
 0x223   :  { %2436 = vmatpush3.bf16.msra.mxu1 %v2435_v29 }
 0x224   :  { %2437 = vmatprep.subr.bf16.mxu1 %v2921_v20 }
 0x227   :  { %2439 = vmatpush3.bf16.msra.mxu1 %v2438_v32 }
 0x228   :  { %2440 = vmatprep.subr.bf16.mxu1 %v2921_v20 }
 0x22b   :  { %2442 = vmatpush3.bf16.msra.mxu1 %v2441_v35 }
 0x22c   :  { %2443 = vmatprep.subr.bf16.mxu1 %v2921_v20 }
 0x2e9   :  { %v1728_v49 = vpop.f32.mrb[12].mxu1 }
 0x2ea   :  { %v2451_v50 = vadd.f32 %v1728_v49, %v1406_v47  ;;  %v1730_v51 = vpop.f32.mrb[13].mxu1  ;;  %v1775_v47 = vrot.slane %v1766_v40, %v3071_v18 }
 0x2eb   :  { %v2452_v52 = vadd.f32 %v1730_v51, %v1410_v48  ;;  %v1732_v53 = vpop.f32.mrb[14].mxu1 }
 0x2ec   :  { %v1733_v54 = vpop.f32.mrb[15].mxu1 }
 0x2ed   :  { %v1735_v55 = vadd.f32 %v2452_v52, %v2451_v50  ;;  %v1970_v54 = vld [vmem:[#allocation10 + $0x60] sm:$0xff] }
 0x2ef   :  { %1736 = vadd.xlane.f32.xlu0 %v1735_v55  ;;  %v1971_v55 = vld [vmem:[#allocation10 + $0x68] sm:$0xff] }
 0x2f0   :  { %v2444_v56 = vpack.c.bf16 %v1971_v55, %v1970_v54 }
 0x2f2   :  { %2445 = vmatpush3.bf16.msra.mxu1 %v2444_v56 }
 0x2f3   :  { %2446 = vmatprep.subr.bf16.mxu1 %v2921_v20 }
 0x2f6   :  { %2448 = vmatpush3.bf16.msra.mxu1 %v2447_v59 }
 0x37c   :  { %v1737_v60 = vpop.xlane.xlu0 %1736 }
 0x37d   :  { %v1739_v61 = vmul.f32 0.00390625, %v1737_v60  ;;  %v2267_v60 = vld [vmem:[%s3126_s8] ss:$0 sm:$0xff] }
 0x37f   :  { %v3080_v62 = vsub.f32 %v2451_v50, %v1739_v61  ;;  %v3082_v63 = vsub.f32 %v2452_v52, %v1739_v61 }
 0x381   :  { %v1742_v0 = vmul.f32 %v3080_v62, %v3080_v62  ;;  %v1743_v1 = vmul.f32 %v3082_v63, %v3082_v63 }
 0x383   :  { %v1744_v2 = vadd.f32 %v1743_v1, %v1742_v0 }
 0x385   :  { %1745 = vadd.xlane.f32.xlu0 %v1744_v2 }
 0x412   :  { %v1746_v36 = vpop.xlane.xlu0 %1745 }
 0x413   :  { %v1747_v37 = vmul.f32 0.00390625, %v1746_v36 }
 0x415   :  { %v1748_v38 = vadd.f32 1e-05, %v1747_v37 }
 0x417   :  { %2767 = vrsqrt.f32 %v1748_v38 }
 0x421   :  { %v2768_v43 = vpop.eup %2767 }
 0x422   :  { %v1750_v44 = vmul.f32 %v2768_v43, %v3080_v62  ;;  %v1751_v45 = vmul.f32 %v2768_v43, %v3082_v63 }
 0x424   :  { %v1765_v48 = vmul.f32 %v1761_v42, %v1751_v45  ;;  %v1764_v49 = vmul.f32 %v1757_v41, %v1750_v44 }
 0x426   :  { %v1779_v50 = vadd.f32 %v1775_v47, %v1765_v48  ;;  %v1778_v51 = vadd.f32 %v1771_v46, %v1764_v49 }
 0x428   :  { %v1781_v52 = vpack.c.bf16 %v1779_v50, %v1779_v50  ;;  %v1780_v53 = vpack.c.bf16 %v1778_v51, %v1778_v51 }
 0x42a   :  { %1949 = vmatprep.mubr.bf16.mxu0 %v1781_v52 }
 0x42b   :  { %1950 = vmatmul.mubr.bf16.vlgmr.msra.gmra.mrb[4].mxu0 %v1780_v53 }
 0x4fe   :  { %v2367_v18 = vpop.f32.mrb[4].mxu0 }
 0x4ff   :  { %v2368_v61 = vpop.f32.mrb[5].mxu0 }
 0x500   :  { %v2369_v62 = vadd.f32 %v2368_v61, %v2367_v18  ;;  %v2370_v63 = vpop.f32.mrb[6].mxu0 }
 0x501   :  { %v2371_v0 = vpop.f32.mrb[7].mxu0 }
 0x502   :  { %v1952_v1 = vadd.f32 %v2369_v62, %v2267_v60 }
 0x504   :  { %v1957_v2 = vmax.f32 %v1952_v1, 0.0 }
 0x506   :  { %2423 = vmatmul.mubr.f32.vlgmr.msra.gmra.mrb[16].mxu1 %v1957_v2 }
 0x5d9   :  { %v2047_v4 = vpop.f32.mrb[16].mxu1 }
 0x5da   :  { %v2048_v5 = vadd.f32 %v2284_v3, %v2047_v4  ;;  %v2424_v6 = vpop.f32.mrb[17].mxu1 }
 0x5dc   :  { %2051 = vst [vmem:[#allocation11] sm:$0xff] %v2048_v5 }
 0x5dd   :  { %2890 = shalt.err (!%p2887_p2)
}
 0x5de   :  { %s2891_s30 = scalar_lea.hbm %s3129_s11, 128 }
 0x5df   :  { %p2892_p3 = scmp.ne.s32.totalorder %s3129_s11, %s2891_s30  ;;  %p2895_p4 = scmp.lt.u32.totalorder %s2891_s30, %s3129_s11 }
 0x5e1   :  { %p2897_p5 = pnand %p2895_p4, %p2892_p3 }
 0x5e3   :  { %2900 = shalt.err (!%p2897_p5)
}
 0x5e4   :  { %2061 = dma.vmem_to_hbm [thread:$0]  %s2059_s26, 128, %s3129_s11, [#allocation4]  }
 0x5e5   :  { %2907 = dma.done.wait [#allocation4], 128  }
 0x5e6   :  { %2908 = vsyncadd [#allocation4], 4294967168 }
 0x5e7   :  { %2065 = vsyncpa [#allocation3], 1 }
 0x5e8   :  { %2066 = vsyncpa [#allocation6], 1 }
 0x5e9   :  { %2067 = vsyncpa [#allocation9], 1 }
 0x5ea   :  { %2068 = vsyncpa [#allocation4], 1 }

</bundles_post_ra>
